<compile_context>
chip_gen: v7x
topology: tpu7x:2x2x1
jax: 0.10.0
libtpu: 0.0.40
codegen_flags: <defaults>
</compile_context>

<pallas_src>
import jax
import jax.numpy as jnp
from jax.experimental import pallas as pl
from jax.experimental.pallas import tpu as pltpu


def _highway_kernel(p_ref, w_ref, z_ref, o_ref):
    # p_ref: (1, KP, HW)   bf16  im2col patches (+ bias ones-row + zero pad)
    # w_ref: (2*CH, KP)    bf16  fused conv weights (+ bias column + zero pad)
    # z_ref: (1, CH, HW)   f32   current hidden state
    # o_ref: (1, CH, HW)   f32   new hidden state
    ch = o_ref.shape[1]
    # Single MXU matmul: all 4 convs + biases fused; f32 accumulation.
    acc = jnp.dot(w_ref[...], p_ref[0], preferred_element_type=jnp.float32)
    p = jnp.tanh(acc[:ch, :])            # (CH, HW) f32
    u = jax.nn.sigmoid(acc[ch:, :])      # (CH, HW) f32
    o_ref[0] = (u * p + (1.0 - u) * z_ref[0]).astype(o_ref.dtype)


def highway_unit_forward(x, z, w_hp, b_hp, w_zp, b_zp, w_hu, b_hu, w_zu, b_zu):
    """x: (N, CIN, H, W); z: (N, CH, H, W); conv weights in OIHW, biases (CH,).

    Returns the new hidden state in NCHW, matching the PyTorch module
    (valid when hidden spatial == input spatial and the kernel is odd-sized,
    so the 'ih' padding equals 'same' padding)."""
    N, CIN, H, W = x.shape
    _, CH, Hh, Wh = z.shape
    assert (H, W) == (Hh, Wh), "hidden spatial size must equal input spatial size"
    KH, KW = w_hp.shape[2], w_hp.shape[3]
    assert KH % 2 == 1 and KW % 2 == 1
    C = CIN + CH
    HW = H * W
    ktot = KH * KW * C
    KP = ((ktot + 1 + 127) // 128) * 128     # +1 bias row, pad K to lane multiple

    # ---- fuse the 4 conv weights into one (2*CH, KP) matrix -------------------
    w_p = jnp.concatenate([w_hp, w_zp], axis=1)            # (CH, C, KH, KW)
    w_u = jnp.concatenate([w_hu, w_zu], axis=1)            # (CH, C, KH, KW)
    w_all = jnp.concatenate([w_p, w_u], axis=0)            # (2CH, C, KH, KW)
    b_all = jnp.concatenate([b_hp + b_zp, b_hu + b_zu])    # (2CH,)
    # tap-major column ordering: col = (dy*KW + dx)*C + c
    wmat = jnp.transpose(w_all, (0, 2, 3, 1)).reshape(2 * CH, ktot)
    wmat = jnp.zeros((2 * CH, KP), jnp.float32).at[:, :ktot].set(wmat)
    wmat = wmat.at[:, ktot].set(b_all.astype(jnp.float32))  # fused-bias column

    # ---- im2col patches: (N, KP, H*W), channel-major ---------------------------
    ph, pw = (KH - 1) // 2, (KW - 1) // 2
    xz = jnp.concatenate([x, z], axis=1).astype(jnp.float32)          # (N, C, H, W)
    xz_p = jnp.pad(xz, ((0, 0), (0, 0), (ph, ph), (pw, pw)))
    taps = [xz_p[:, :, dy:dy + H, dx:dx + W]
            for dy in range(KH) for dx in range(KW)]                  # (N, C, H, W) each
    patches = jnp.concatenate(taps, axis=1).reshape(N, ktot, HW)
    patches = jnp.concatenate(
        [patches,
         jnp.ones((N, 1, HW), jnp.float32),                           # bias row
         jnp.zeros((N, KP - ktot - 1, HW), jnp.float32)], axis=1)     # (N, KP, HW)

    z_flat = z.reshape(N, CH, HW).astype(jnp.float32)

    out = pl.pallas_call(
        _highway_kernel,
        out_shape=jax.ShapeDtypeStruct((N, CH, HW), jnp.float32),
        grid_spec=pltpu.PrefetchScalarGridSpec(
            num_scalar_prefetch=0,
            grid=(N,),  # one batch element per grid step; independent -> parallel
            in_specs=[
                pl.BlockSpec((1, KP, HW), lambda n: (n, 0, 0)),
                pl.BlockSpec((2 * CH, KP), lambda n: (0, 0)),
                pl.BlockSpec((1, CH, HW), lambda n: (n, 0, 0)),
            ],
            out_specs=pl.BlockSpec((1, CH, HW), lambda n: (n, 0, 0)),
        ),
        compiler_params=pltpu.CompilerParams(
            dimension_semantics=("parallel",)),
    )(patches.astype(jnp.bfloat16), wmat.astype(jnp.bfloat16), z_flat)

    return out.reshape(N, CH, H, W)


def _reference_forward(x, z, w_hp, b_hp, w_zp, b_zp, w_hu, b_hu, w_zu, b_zu):
    """Pure-JAX reference (lax conv, NCHW/OIHW) mirroring the PyTorch forward."""
    def conv(inp, w, b):
        y = jax.lax.conv_general_dilated(
            inp, w, window_strides=(1, 1), padding="SAME",
            dimension_numbers=("NCHW", "OIHW", "NCHW"))
        return y + b.reshape(1, -1, 1, 1)

    p = jnp.tanh(conv(x, w_hp, b_hp) + conv(z, w_zp, b_zp))
    u = jax.nn.sigmoid(conv(x, w_hu, b_hu) + conv(z, w_zu, b_zu))
    return u * p + (1.0 - u) * z


if __name__ == "__main__":
    # Module config: input_size=(4,16,16), hidden_size=(8,16,16), kernel_HW=(3,3)
    N, CIN, CH, H, W, KH, KW = 2, 4, 8, 16, 16, 3, 3

    key = jax.random.PRNGKey(0)
    keys = jax.random.split(key, 10)

    def init_conv(kw_key, kb_key, cout, cin, kh, kww):
        bound = 1.0 / jnp.sqrt(cin * kh * kww)
        w = jax.random.uniform(kw_key, (cout, cin, kh, kww), jnp.float32,
                               minval=-bound, maxval=bound)   # OIHW (PyTorch layout)
        b = jax.random.uniform(kb_key, (cout,), jnp.float32,
                               minval=-bound, maxval=bound)
        return w, b

    w_hp, b_hp = init_conv(keys[0], keys[1], CH, CIN, KH, KW)  # conv_hp ('ih')
    w_zp, b_zp = init_conv(keys[2], keys[3], CH, CH, KH, KW)   # conv_zp ('hh')
    w_hu, b_hu = init_conv(keys[4], keys[5], CH, CIN, KH, KW)  # conv_hu ('ih')
    w_zu, b_zu = init_conv(keys[6], keys[7], CH, CH, KH, KW)   # conv_zu ('hh')

    x = jax.random.normal(keys[8], (N, CIN, H, W), jnp.float32)
    z = jax.random.normal(keys[9], (N, CH, H, W), jnp.float32)

    out = highway_unit_forward(x, z, w_hp, b_hp, w_zp, b_zp,
                               w_hu, b_hu, w_zu, b_zu)
    out = jax.block_until_ready(out)

    ref = _reference_forward(x, z, w_hp, b_hp, w_zp, b_zp,
                             w_hu, b_hu, w_zu, b_zu)
    ref = jax.block_until_ready(ref)

    assert out.shape == (N, CH, H, W)
    # bf16 matmul operands (f32 accumulation) -> ~1e-2-scale tolerance is expected.
    assert jnp.allclose(out, ref, atol=5e-2, rtol=5e-2), "mismatch vs reference"

    print("KERNEL_OK")
</pallas_src>

<mosaic_0001>
module attributes {stable_mosaic.version = 11 : i64} {
  func.func @_highway_kernel(%arg0: i32, %arg1: memref<1x128x256xbf16, #tpu.memory_space<vmem>>, %arg2: memref<16x128xbf16, #tpu.memory_space<vmem>>, %arg3: memref<1x8x256xf32, #tpu.memory_space<vmem>>, %arg4: memref<1x8x256xf32, #tpu.memory_space<vmem>>) attributes {dimension_semantics = [#tpu.dimension_semantics<parallel>], iteration_bounds = array<i64: 2>, scalar_prefetch = 0 : i64, scratch_operands = 0 : i64, tpu.core_type = #tpu.core_type<tc>, window_params = [{transform_indices = @transform_0, window_bounds = array<i64: 1, 128, 256>}, {pipeline_mode = #tpu.pipeline_mode<synchronous>, transform_indices = @transform_1, window_bounds = array<i64: 16, 128>}, {transform_indices = @transform_2, window_bounds = array<i64: 1, 8, 256>}, {transform_indices = @transform_3, window_bounds = array<i64: 1, 8, 256>}]} {
    %c0 = arith.constant 0 : index
    %c0_0 = arith.constant 0 : index
    %0 = vector.load %arg2[%c0, %c0_0] : memref<16x128xbf16, #tpu.memory_space<vmem>>, vector<16x128xbf16>
    %c0_1 = arith.constant 0 : index
    %c0_2 = arith.constant 0 : index
    %c0_3 = arith.constant 0 : index
    %1 = vector.load %arg1[%c0_1, %c0_2, %c0_3] : memref<1x128x256xbf16, #tpu.memory_space<vmem>>, vector<1x128x256xbf16>
    %2 = vector.shape_cast %1 : vector<1x128x256xbf16> to vector<128x256xbf16>
    %cst = arith.constant dense<0.000000e+00> : vector<16x256xf32>
    %3 = tpu.matmul %0, %2, %cst {dimension_numbers = #tpu.dot_dimension_numbers<[1], [0], [0], [1], [0, 0, 1, 1], [], []>} : vector<16x128xbf16>, vector<128x256xbf16>, vector<16x256xf32> -> vector<16x256xf32>
    %4 = vector.extract_strided_slice %3 {offsets = [0, 0], sizes = [8, 256], strides = [1, 1]} : vector<16x256xf32> to vector<8x256xf32>
    %5 = math.tanh %4 : vector<8x256xf32>
    %6 = vector.extract_strided_slice %3 {offsets = [8, 0], sizes = [8, 256], strides = [1, 1]} : vector<16x256xf32> to vector<8x256xf32>
    %7 = arith.negf %6 : vector<8x256xf32>
    %8 = math.exp %7 : vector<8x256xf32>
    %cst_4 = arith.constant 1.000000e+00 : f32
    %9 = vector.broadcast %cst_4 : f32 to vector<8x256xf32>
    %10 = arith.addf %9, %8 : vector<8x256xf32>
    %11 = arith.divf %9, %10 : vector<8x256xf32>
    %12 = arith.mulf %11, %5 : vector<8x256xf32>
    %cst_5 = arith.constant 1.000000e+00 : f32
    %13 = vector.broadcast %cst_5 : f32 to vector<8x256xf32>
    %14 = arith.subf %13, %11 : vector<8x256xf32>
    %c0_6 = arith.constant 0 : index
    %c0_7 = arith.constant 0 : index
    %c0_8 = arith.constant 0 : index
    %15 = vector.load %arg3[%c0_6, %c0_7, %c0_8] : memref<1x8x256xf32, #tpu.memory_space<vmem>>, vector<1x8x256xf32>
    %16 = vector.shape_cast %15 : vector<1x8x256xf32> to vector<8x256xf32>
    %17 = arith.mulf %14, %16 : vector<8x256xf32>
    %18 = arith.addf %12, %17 : vector<8x256xf32>
    %c0_9 = arith.constant 0 : index
    %c0_10 = arith.constant 0 : index
    %c0_11 = arith.constant 0 : index
    %19 = vector.load %arg4[%c0_9, %c0_10, %c0_11] : memref<1x8x256xf32, #tpu.memory_space<vmem>>, vector<1x8x256xf32>
    %20 = vector.shape_cast %19 : vector<1x8x256xf32> to vector<8x256xf32>
    %21 = vector.shape_cast %18 : vector<8x256xf32> to vector<1x8x256xf32>
    tpu.vector_store %arg4[%c0_9, %c0_10, %c0_11], %21 {strides = array<i32>} : memref<1x8x256xf32, #tpu.memory_space<vmem>>, vector<1x8x256xf32>,
    return
  }
  func.func @transform_0(%arg0: i32) -> (i32, i32, i32) {
    %c0_i32 = arith.constant 0 : i32
    %c0_i32_0 = arith.constant 0 : i32
    %c0_i32_1 = arith.constant 0 : i32
    return %arg0, %c0_i32, %c0_i32_0 : i32, i32, i32
  }
  func.func @transform_1(%arg0: i32) -> (i32, i32) {
    %c0_i32 = arith.constant 0 : i32
    %c0_i32_0 = arith.constant 0 : i32
    %c0_i32_1 = arith.constant 0 : i32
    return %c0_i32, %c0_i32_0 : i32, i32
  }
  func.func @transform_2(%arg0: i32) -> (i32, i32, i32) {
    %c0_i32 = arith.constant 0 : i32
    %c0_i32_0 = arith.constant 0 : i32
    %c0_i32_1 = arith.constant 0 : i32
    return %arg0, %c0_i32, %c0_i32_0 : i32, i32, i32
  }
  func.func @transform_3(%arg0: i32) -> (i32, i32, i32) {
    %c0_i32 = arith.constant 0 : i32
    %c0_i32_0 = arith.constant 0 : i32
    %c0_i32_1 = arith.constant 0 : i32
    return %arg0, %c0_i32, %c0_i32_0 : i32, i32, i32
  }
}

</mosaic_0001>

<bundles_post_ra>
// kernel: tpu_custom_call.1
= control target key start
LH: loop header
LB: loop body
LE: loop exit
PB: predicated region body
PF: predicated region fallthrough
CT: control target
= control target key end

     0   :  { %8 = vsyncpa [#allocation3], 0  ;;  %s1138_s0 = inlined_call_operand.hbm [shape: bf16[2,128,256], index: 0, kind: input, shape index: {}]   ;;  %s1139_s1 = inlined_call_operand.hbm [shape: bf16[16,128], index: 1, kind: input, shape index: {}]   ;;  %s1140_s2 = inlined_call_operand.hbm [shape: f32[2,8,256], index: 2, kind: input, shape index: {}]   ;;  %s1141_s3 = inlined_call_operand.hbm [shape: f32[2,8,256], index: 3, kind: output, shape index: {}]  }
   0x1   :  { %10 = vsyncpa [#allocation3 + $0x1], 0 }
   0x2   :  { %11 = vsyncpa [#allocation6], 0 }
   0x3   :  { %12 = vsyncpa [#allocation4], 0 }
   0x4   :  { %14 = vsyncpa [#allocation4 + $0x1], 0  ;;  %s867_s12 = smov 0   ;;  %s869_s13 = smov 0  }
   0x5   :  { %s871_s14 = smov 0   ;;  %s873_s15 = smov 0  }
   0x6 LB: > { %s888_s16 = sadd.s32 1, %s836_s15   ;;  %s27_s17 = sadd.s32 1, %s832_s14  ;;  %s836_s15 = sphi %s873_s15, %s1168_s15   ;;  %s832_s14 = sphi %s871_s14, %s1167_s14   ;;  %s828_s13 = sphi %s869_s13, %s1166_s13   ;;  %s824_s12 = sphi %s867_s12, %s1165_s12  }
   0x7   : > { %s24_s18 = ssub.s32 %s836_s15, %s888_s16  ;;  %p34_p0 = scmp.ne.s32.totalorder %s832_s14, %s828_s13 }
   0x8   : > { %p25_p1 = scmp.eq.s32.totalorder %s24_s18, 0  ;;  %p35_p2 = scmp.eq.s32.totalorder %s836_s15, 0 }
   0x9   : > { %p596_p4 = scmp.lt.s32.totalorder %s836_s15, 2  ;;  %s150_s20 = sand.u32 1, %s836_s15  }
   0xa   : > { %s899_s19 = scalar_select %p25_p1, %s832_s14, %s27_s17  }
   0xb   : > { %p36_p5 = por %p35_p2, %p34_p0  ;;  %s152_s21 = sand.u32 1, %s832_s14  }
   0xc   : > { %s532_s22 = sshll.u32 %s152_s21, 7  ;;  %s567_s23 = sshll.u32 %s836_s15, 11 }
   0xd   : > { %s912_s26 = scalar_lea.hbm %s1138_s0, %s567_s23  ;;  %s154_s27 = scalar_lea.vmem [#allocation2], %s532_s22 }
   0xe   : > { %s161_s28 = sshll.u32 %s154_s27, 4  ;;  %p914_p6 = pnand %p596_p4, %p36_p5  ;;  %s918_s28 = int_to_ptr.vmem [resolvable:$true] %s161_s28 }
   0xf   : > { %s920_s30 = scalar_lea.sflag [#allocation3], %s150_s20  ;;  %s674_s4 = scalar_lea.hbm %s912_s26, 2048 }
  0x10   : > { %s1149_s29 = scalar_select %p914_p6, 1, 0 }
  0x11   : > { %p675_p7 = scmp.ne.s32.totalorder %s912_s26, %s674_s4  ;;  %p1143_p8 = pneg %p914_p6 }
  0x12   : > { %s679_s7 = scalar_lea.hbm %s1138_s0, 4096  ;;  %p680_p11 = scmp.lt.u32.totalorder %s912_s26, %s1138_s0 }
  0x13   : > { %p677_p9 = pnand %p1143_p8, %p675_p7  ;;  %p681_p12 = scmp.lt.u32.totalorder %s679_s7, %s674_s4 }
  0x14   : > { %p683_p1 = scmp.lt.u32.totalorder %s674_s4, %s912_s26 }
  0x15   : > { %p678_p10 = pneg %p677_p9  ;;  %p682_p13 = por %p681_p12, %p680_p11 }
  0x17   : > { %p684_p2 = por %p683_p1, %p682_p13 }
  0x19   : > { %p685_p4 = pnand %p684_p2, %p678_p10 }
  0x1b   : > { %688 = shalt.err (!%p685_p4)
}
  0x1c   : > { %s689_s10 = scalar_lea.vmem %s918_s28, 2048  ;;  %s838_s11 = smov [#allocation2]  }
  0x1d   : > { %p690_p5 = scmp.ne.s32.totalorder %s918_s28, %s689_s10  ;;  %s694_s17 = sshll.u32 %s838_s11, 4  ;;  %s695_s17 = int_to_ptr.vmem [resolvable:$false] %s694_s17 }
  0x1e   : > { %s696_s18 = scalar_lea.vmem %s695_s17, 4096  ;;  %p697_p3 = scmp.lt.s32.totalorder %s918_s28, %s695_s17 }
  0x1f   : > { %p692_p7 = pnand %p690_p5, %p1143_p8  ;;  %p698_p11 = scmp.lt.s32.totalorder %s696_s18, %s689_s10 }
  0x21   : > { %p693_p9 = pneg %p692_p7  ;;  %p699_p12 = por %p698_p11, %p697_p3 }
  0x23   : > { %p700_p13 = pnand %p699_p12, %p693_p9 }
  0x25   : > { %703 = shalt.err (!%p700_p13)
}
  0x26   : > { %s839_s20 = smov 128   ;;  %s840_s22 = smov 8  }
  0x27   : > { %587 = dma.hbm_to_vmem [thread:$0]  (!%p914_p6), %s912_s26, 2048, %s918_s28, %s920_s30, %s839_s20, %s839_s20, %s840_s22  }
  0x28   : > { %s949_s23 = sadd.s32 4294967295, %s836_s15   ;;  %s528_s24 = sadd.s32 4294967294, %s836_s15  }
  0x29   : > { %p40_p3 = scmp.ne.s32.totalorder %s828_s13, %s824_s12  ;;  %p1142_p10 = scmp.eq.s32.totalorder %s949_s23, 0 }
  0x2a   : > { %p111_p1 = scmp.eq.s32.totalorder %s949_s23, 1  ;;  %p117_p2 = scmp.eq.s32.totalorder %s528_s24, 1 }
  0x2b   : > { %p958_p4 = por %p1142_p10, %p40_p3  ;;  %p529_p5 = scmp.ge.s32.totalorder %s836_s15, 1 }
  0x2c   : > { %p966_p7 = por %p111_p1, %p34_p0  ;;  %p970_p9 = por %p117_p2, %p40_p3 }
  0x2d   : > { %s1150_s25 = scalar_select %p958_p4, 1, 0 }
  0x2e   : > { %s1151_s26 = scalar_select %p966_p7, 1, 0 }
  0x2f   : > { %s1152_s27 = scalar_select %p970_p9, 1, 0 }
  0x30   : > { %p124_p11 = scmp.lt.s32.totalorder %s836_s15, 3  ;;  %s841_s4 = smov [#allocation5]  }
  0x31   : > { %s136_s5 = sshll.u32 %s841_s4, 4  ;;  %s535_s6 = sshll.u32 %s152_s21, 4  ;;  %s979_s5 = int_to_ptr.vmem [resolvable:$true] %s136_s5 }
  0x32   : > { %p975_p12 = pnand %p529_p5, %p124_p11  ;;  %s568_s7 = sshll.u32 %s836_s15, 8 }
  0x33   : > { %s995_s11 = scalar_lea.hbm %s1140_s2, %s568_s7  ;;  %s175_s17 = scalar_lea.vmem [#allocation7], %s535_s6 }
  0x34   : > { %s1153_s28 = scalar_select %p975_p12, 1, 0 }
  0x35   : > { %p580_p13 = pneg %p975_p12  ;;  %s183_s18 = sshll.u32 %s175_s17, 4  ;;  %s997_s18 = int_to_ptr.vmem [resolvable:$true] %s183_s18 }
  0x36   : > { %s704_s21 = scalar_lea.hbm %s1139_s1, 128 }
  0x37   : > { %p988_p0 = pnand %p580_p13, %p1142_p10  ;;  %p705_p3 = scmp.ne.s32.totalorder %s1139_s1, %s704_s21 }
  0x38   : > { %p711_p11 = scmp.lt.u32.totalorder %s704_s21, %s1139_s1 }
  0x39   : > { %p706_p1 = pneg %p988_p0 }
  0x3b   : > { %p707_p2 = pnand %p706_p1, %p705_p3 }
  0x3d   : > { %p708_p5 = pneg %p707_p2 }
  0x3f   : > { %p713_p13 = pnand %p711_p11, %p708_p5 }
  0x41   : > { %716 = shalt.err (!%p713_p13)
}
  0x42   : > { %s717_s6 = scalar_lea.vmem %s979_s5, 128  ;;  %p725_p7 = scmp.lt.s32.totalorder %s979_s5, %s979_s5 }
  0x43   : > { %p718_p10 = scmp.ne.s32.totalorder %s979_s5, %s717_s6  ;;  %p726_p4 = scmp.lt.s32.totalorder %s717_s6, %s717_s6 }
  0x45   : > { %p720_p8 = pnand %p718_p10, %p706_p1  ;;  %p727_p12 = por %p726_p4, %p725_p7 }
  0x47   : > { %p721_p9 = pneg %p720_p8 }
  0x49   : > { %p728_p6 = pnand %p727_p12, %p721_p9 }
  0x4b   : > { %731 = shalt.err (!%p728_p6)
}
  0x4c   : > { %s842_s7 = smov 64   ;;  %s843_s17 = smov 4  }
  0x4d   : > { %583 = dma.hbm_to_vmem [thread:$0]  (!%p988_p0), %s1139_s1, 128, %s979_s5, [#allocation6], %s842_s7, %s842_s7, %s843_s17  }
  0x4e   : > { %s732_s21 = scalar_lea.hbm %s995_s11, 256  ;;  %p1155_p10 = scmp.ne.s32.totalorder %s1149_s29, 0 }
  0x4f   : > { %p733_p8 = scmp.ne.s32.totalorder %s995_s11, %s732_s21  ;;  %s737_s9 = scalar_lea.hbm %s1140_s2, 512 }
  0x50   : > { %p1156_p4 = pneg %p1155_p10  ;;  %p738_p9 = scmp.lt.u32.totalorder %s995_s11, %s1140_s2 }
  0x51   : > { %p739_p12 = scmp.lt.u32.totalorder %s737_s9, %s732_s21  ;;  %p741_p1 = scmp.lt.u32.totalorder %s732_s21, %s995_s11 }
  0x52   : > { %p735_p7 = pnand %p733_p8, %p1156_p4 }
  0x53   : > { %p740_p3 = por %p739_p12, %p738_p9 }
  0x54   : > { %p736_p6 = pneg %p735_p7 }
  0x55   : > { %p742_p2 = por %p741_p1, %p740_p3 }
  0x57   : > { %p743_p5 = pnand %p742_p2, %p736_p6 }
  0x59   : > { %746 = shalt.err (!%p743_p5)
}
  0x5a   : > { %s747_s5 = scalar_lea.vmem %s997_s18, 256  ;;  %p1157_p11 = pmov %p1156_p4 }
  0x5b   : > { %p748_p0 = scmp.ne.s32.totalorder %s997_s18, %s747_s5  ;;  %s844_s8 = smov [#allocation7]  }
  0x5c   : > { %s752_s7 = sshll.u32 %s844_s8, 4  ;;  %s753_s7 = int_to_ptr.vmem [resolvable:$false] %s752_s7 }
  0x5d   : > { %p750_p13 = pnand %p748_p0, %p1157_p11  ;;  %s754_s17 = scalar_lea.vmem %s753_s7, 512 }
  0x5e   : > { %p755_p4 = scmp.lt.s32.totalorder %s997_s18, %s753_s7  ;;  %p756_p7 = scmp.lt.s32.totalorder %s754_s17, %s747_s5 }
  0x5f   : > { %p751_p8 = pneg %p750_p13 }
  0x60   : > { %p757_p9 = por %p756_p7, %p755_p4 }
  0x62   : > { %p758_p12 = pnand %p757_p9, %p751_p8 }
  0x64   : > { %761 = shalt.err (!%p758_p12)
}
  0x65   : > { %590 = dma.hbm_to_vmem [thread:$0]  (!%p1155_p10), %s995_s11, 256, %s997_s18, %s920_s30  }
  0x66   : > { %p1158_p6 = scmp.ne.s32.totalorder %s1153_s28, 0 }
  0x67   : > { %s194_s20 = sand.u32 (!%p1158_p6), 1, %s949_s23   ;;  %s1048_s22 = sand.u32 (!%p1158_p6), 1, %s828_s13  }
  0x68   : > { %192 = sbr.rel (%p1158_p6) target bundleno = 412 (0x19c), region = 32  ;;  %s539_s21 = sshll.u32 (!%p1158_p6), %s1048_s22, 7 }
  0x69   : > { %s195_s24 = scalar_lea.sflag (!%p1158_p6), [#allocation3], %s194_s20  ;;  %s1051_s4 = scalar_lea.vmem (!%p1158_p6), [#allocation2], %s539_s21 }
  0x6a   : > { %p1159_p3 = scmp.ne.s32.totalorder (!%p1158_p6), %s1150_s25, 0 }
  0x6f   : > { %807 = dma.done.wait (%p1159_p3), %s195_s24, 2048  }
  0x70   : > { %809 = vsyncadd (%p1159_p3), %s195_s24, 4294965248  ;;  %p1160_p10 = scmp.eq.s32.totalorder %s949_s23, 0 }
  0x72   : > { %811 = dma.done.wait (%p1160_p10), [#allocation6], 128   ;;  %p1161_p1 = pmov %p1160_p10 }
  0x73   : > { %s541_s29 = sshll.u32 %s1048_s22, 4 }
  0x74   : > { %813 = vsyncadd (%p1161_p1), [#allocation6], 4294967168  ;;  %s1064_s30 = scalar_lea.vmem [#allocation7], %s541_s29 }
  0x75   : > { %815 = dma.done.wait (%p1159_p3), %s195_s24, 256  }
  0x76   : > { %817 = vsyncadd (%p1159_p3), %s195_s24, 4294967040  ;;  %v845_v0 = vmov 0   ;;  %v637_v1 = vld [vmem:[%s1051_s4 + $0x4] ss:$8 sps:$4 sm:$0xff]   ;;  %v639_v2 = vld [vmem:[%s1051_s4] ss:$8 sps:$4 sm:$0xff]  }
  0x77   : > { %376 = vmatprep.mubr.bf16.mxu0 %v845_v0  ;;  %344 = vmatprep.subr.bf16.mxu0 %v637_v1  ;;  %v640_v3 = vld [vmem:[%s1051_s4 + $0x14] ss:$8 sps:$4 sm:$0xff]   ;;  %v642_v4 = vld [vmem:[%s1051_s4 + $0x10] ss:$8 sps:$4 sm:$0xff]   ;;  %v643_v5 = vld [vmem:[%s1051_s4 + $0x24] ss:$8 sps:$4 sm:$0xff]  }
  0x78   : > { %345 = vmatpush1.bf16.msra.mxu0 %v639_v2  ;;  %v645_v6 = vld [vmem:[%s1051_s4 + $0x20] ss:$8 sps:$4 sm:$0xff]   ;;  %v646_v7 = vld [vmem:[%s1051_s4 + $0x34] ss:$8 sps:$4 sm:$0xff]   ;;  %v648_v8 = vld [vmem:[%s1051_s4 + $0x30] ss:$8 sps:$4 sm:$0xff]  }
  0x79   : > { %346 = vmatprep.subr.bf16.mxu0 %v640_v3  ;;  %v649_v9 = vld [vmem:[%s1051_s4 + $0x44] ss:$8 sps:$4 sm:$0xff]   ;;  %v651_v10 = vld [vmem:[%s1051_s4 + $0x40] ss:$8 sps:$4 sm:$0xff]   ;;  %v652_v11 = vld [vmem:[%s1051_s4 + $0x54] ss:$8 sps:$4 sm:$0xff]  }
  0x7a   : > { %v654_v12 = vld [vmem:[%s1051_s4 + $0x50] ss:$8 sps:$4 sm:$0xff]   ;;  %v655_v13 = vld [vmem:[%s1051_s4 + $0x64] ss:$8 sps:$4 sm:$0xff]   ;;  %v657_v14 = vld [vmem:[%s1051_s4 + $0x60] ss:$8 sps:$4 sm:$0xff]  }
  0x7b   : > { %v658_v15 = vld [vmem:[%s1051_s4 + $0x74] ss:$8 sps:$4 sm:$0xff]   ;;  %v660_v16 = vld [vmem:[%s1051_s4 + $0x70] ss:$8 sps:$4 sm:$0xff]   ;;  %v661_v17 = vld [vmem:[#allocation5] sm:$0xff]   ;;  %s569_s25 = sshll.u32 %s949_s23, 8 }
  0x7c   : > { %347 = vmatpush1.bf16.msra.mxu0 %v642_v4  ;;  %v405_v31 = vld [vmem:[%s1064_s30] sm:$0xff]  ;;  %v406_v35 = vld [vmem:[%s1064_s30 + $0x8] sm:$0xff]  ;;  %s238_s28 = scalar_lea.vmem [#allocation8], %s541_s29  ;;  %s1094_s10 = scalar_lea.hbm %s1141_s3, %s569_s25 }
  0x7d   : > { %348 = vmatprep.subr.bf16.mxu0 %v643_v5  ;;  %s428_s11 = sshll.u32 %s238_s28, 4  ;;  %s414_s6 = scalar_lea.sflag [#allocation4], %s1048_s22  ;;  %s1096_s11 = int_to_ptr.vmem [resolvable:$true] %s428_s11 }
  0x7e   : > { %s762_s23 = scalar_lea.vmem %s1096_s11, 256  ;;  %p1162_p5 = scmp.ne.s32.totalorder %s1151_s26, 0 }
  0x7f   : > { %p763_p2 = scmp.ne.s32.totalorder %s1096_s11, %s762_s23  ;;  %s846_s5 = smov [#allocation8]  }
  0x80   : > { %349 = vmatpush1.bf16.msra.mxu0 %v645_v6  ;;  %s766_s8 = sshll.u32 %s846_s5, 4  ;;  %s767_s8 = int_to_ptr.vmem [resolvable:$false] %s766_s8 }
  0x81   : > { %350 = vmatprep.subr.bf16.mxu0 %v646_v7  ;;  %p764_p0 = pnand %p763_p2, %p1162_p5  ;;  %s768_s7 = scalar_lea.vmem %s767_s8, 512 }
  0x82   : > { %p769_p13 = scmp.lt.s32.totalorder %s1096_s11, %s767_s8  ;;  %p770_p8 = scmp.lt.s32.totalorder %s768_s7, %s762_s23 }
  0x83   : > { %p765_p11 = pneg %p764_p0 }
  0x84   : > { %351 = vmatpush1.bf16.msra.mxu0 %v648_v8  ;;  %p771_p4 = por %p770_p8, %p769_p13 }
  0x85   : > { %352 = vmatprep.subr.bf16.mxu0 %v649_v9 }
  0x86   : > { %p772_p7 = pnand %p771_p4, %p765_p11 }
  0x88   : > { %353 = vmatpush1.bf16.msra.mxu0 %v651_v10 }
  0x89   : > { %354 = vmatprep.subr.bf16.mxu0 %v652_v11 }
  0x8c   : > { %355 = vmatpush1.bf16.msra.mxu0 %v654_v12 }
  0x8d   : > { %356 = vmatprep.subr.bf16.mxu0 %v655_v13 }
  0x90   : > { %357 = vmatpush1.bf16.msra.mxu0 %v657_v14 }
  0x91   : > { %358 = vmatprep.subr.bf16.mxu0 %v658_v15 }
  0x94   : > { %359 = vmatpush1.bf16.msra.mxu0 %v660_v16 }
  0x97   : > { %377 = vmatmul.mubr.bf16.vlgmr.msra.gmra.mrb[0].mxu0 %v661_v17 }
 0x16a   : > { %v378_v18 = vpop.f32.mrb[0].mxu0 }
 0x16b   : > { %v380_v19 = vpop.f32.mrb[1].mxu0 }
 0x16c   : > { %v382_v20 = vpop.f32.mrb[2].mxu0 }
 0x16d   : > { %v560_v21 = vmul.f32 -1.442695, %v382_v20  ;;  %v384_v22 = vpop.f32.mrb[3].mxu0 }
 0x16e   : > { %v561_v23 = vmul.f32 -1.442695, %v384_v22 }
 0x16f   : > { %662 = vpow2.f32 %v560_v21 }
 0x170   : > { %664 = vpow2.f32 %v561_v23 }
 0x171   : > { %666 = vtanh.f32 %v378_v18 }
 0x172   : > { %668 = vtanh.f32 %v380_v19 }
 0x179   : > { %v663_v24 = vpop.eup %662 }
 0x17a   : > { %v665_v25 = vpop.eup %664  ;;  %v395_v26 = vadd.f32 1.0, %v663_v24 }
 0x17b   : > { %v396_v27 = vadd.f32 1.0, %v665_v25  ;;  %v667_v28 = vpop.eup %666 }
 0x17c   : > { %670 = vrcp.f32 %v395_v26  ;;  %v669_v29 = vpop.eup %668 }
 0x17d   : > { %672 = vrcp.f32 %v396_v27 }
 0x186   : > { %v671_v30 = vpop.eup %670 }
 0x187   : > { %v673_v32 = vpop.eup %672  ;;  %v403_v33 = vsub.f32 1.0, %v671_v30  ;;  %v401_v34 = vmul.f32 %v671_v30, %v667_v28 }
 0x188   : > { %v402_v36 = vmul.f32 %v673_v32, %v669_v29  ;;  %v404_v37 = vsub.f32 1.0, %v673_v32 }
 0x189   : > { %v407_v38 = vmul.f32 %v405_v31, %v403_v33 }
 0x18a   : > { %v408_v39 = vmul.f32 %v406_v35, %v404_v37 }
 0x18b   : > { %v409_v40 = vadd.f32 %v407_v38, %v401_v34 }
 0x18c   : > { %v410_v41 = vadd.f32 %v408_v39, %v402_v36 }
 0x18d   : > { %411 = vst [vmem:[%s238_s28] sm:$0xff] %v409_v40 }
 0x18e   : > { %412 = vst [vmem:[%s238_s28 + $0x8] sm:$0xff] %v410_v41 }
 0x18f   : > { %775 = shalt.err (!%p772_p7)
}
 0x190   : > { %s776_s17 = scalar_lea.hbm %s1094_s10, 256  ;;  %s780_s21 = scalar_lea.hbm %s1141_s3, 512 }
 0x191   : > { %p777_p9 = scmp.ne.s32.totalorder %s1094_s10, %s776_s17  ;;  %p781_p3 = scmp.lt.u32.totalorder %s1094_s10, %s1141_s3 }
 0x192   : > { %p782_p10 = scmp.lt.u32.totalorder %s780_s21, %s776_s17  ;;  %p784_p2 = scmp.lt.u32.totalorder %s776_s17, %s1094_s10 }
 0x193   : > { %p778_p12 = pnand %p777_p9, %p1162_p5 }
 0x194   : > { %p783_p1 = por %p782_p10, %p781_p3 }
 0x195   : > { %p779_p6 = pneg %p778_p12 }
 0x196   : > { %p785_p0 = por %p784_p2, %p783_p1 }
 0x198   : > { %p786_p11 = pnand %p785_p0, %p779_p6 }
 0x19a   : > { %789 = shalt.err (!%p786_p11)
}
 0x19b   : > { %578 = dma.vmem_to_hbm [thread:$0]  (%p1162_p5), %s1096_s11, 256, %s1094_s10, %s414_s6  }
 0x19c PF: > { %s440_s29 = sand.u32 1, %s824_s12   ;;  %p1163_p13 = scmp.ne.s32.totalorder %s1152_s27, 0 }
 0x19d   : > { %p1164_p8 = scmp.ge.s32.totalorder %s836_s15, 2  ;;  %s441_s30 = scalar_lea.sflag [#allocation4], %s440_s29 }
 0x19f   : > { %p592_p4 = pnand %p1164_p8, %p1163_p13 }
 0x1a1   : > { %819 = dma.done.wait (!%p592_p4), %s441_s30, 256  }
 0x1a2   : > { %821 = vsyncadd (!%p592_p4), %s441_s30, 4294967040  ;;  %p17_p7 = scmp.ge.s32.totalorder %s888_s16, 4   ;;  %s1165_s12 = smov %s828_s13 }
 0x1a3   : > { %s1166_s13 = smov %s832_s14  ;;  %s1167_s14 = smov %s899_s19 }
 0x1a4   : > { %s1168_s15 = smov %s888_s16  ;;  %19 = sbr.rel (!%p17_p7) target bundleno = 6 (0x6), region = 92 }
 0x1ab   :  { %446 = vsyncpa [#allocation3], 1 }
 0x1ac   :  { %448 = vsyncpa [#allocation3 + $0x1], 1 }
 0x1ad   :  { %449 = vsyncpa [#allocation6], 1 }
 0x1ae   :  { %450 = vsyncpa [#allocation4], 1 }
 0x1af   :  { %452 = vsyncpa [#allocation4 + $0x1], 1 }

</bundles_post_ra>
